<compile_context>
chip_gen: v7x
topology: tpu7x:2x2x1
jax: 0.10.0
libtpu: 0.0.40
codegen_flags: <defaults>
</compile_context>

<pallas_src>
import functools

import jax
import jax.numpy as jnp
from jax.experimental import pallas as pl
from jax.experimental.pallas import tpu as pltpu

_W_SLAB_BUDGET = 8 * 1024 * 1024       # double-buffered weight slab budget (bytes)
_VMEM_BUDGET = 20 * 1024 * 1024        # total per-step VMEM budget (bytes)


def _residual_kernel(seed_ref, x_ref, gamma_ref, beta_ref, w_ref, b_ref, o_ref, h_ref,
                     *, eps: float, keep_prob: float, keep_threshold: int,
                     tn: int, d_model: int, num_j: int):
    """Grid point (i, j): row tile i (tm rows), output-feature tile j (tn cols)."""
    i = pl.program_id(0)
    tm = o_ref.shape[0]

    # ---- LayerNorm over d_model (f32 statistics), cached in VMEM in matmul dtype ----
    def compute_ln():
        x = x_ref[...].astype(jnp.float32)                       # (tm, D)
        mean = jnp.mean(x, axis=-1, keepdims=True)
        var = jnp.mean(jnp.square(x - mean), axis=-1, keepdims=True)
        xn = (x - mean) * jax.lax.rsqrt(var + eps)
        h = xn * gamma_ref[...].astype(jnp.float32) + beta_ref[...].astype(jnp.float32)
        h_ref[...] = h.astype(h_ref.dtype)

    if num_j == 1:
        j = 0
        compute_ln()                                              # every step owns its rows
    else:
        j = pl.program_id(1)
        pl.when(j == 0)(compute_ln)                               # once per row tile

    # ---- sublayer: Linear(d_model -> d_model), column tile on the MXU ----
    # bf16 x bf16 -> f32 accumulate.
    y = jnp.dot(h_ref[...], w_ref[...], preferred_element_type=jnp.float32)   # (tm, tn)
    y = y + b_ref[...].astype(jnp.float32)

    # ---- Dropout (inverted dropout, matches nn.Dropout in train mode) ----
    # Counter-based hash (lowbias32 mix) of the GLOBAL element index + seed, compared
    # directly against a uint32 keep-threshold (no float conversion, no signed-shift
    # bias, independent of the tiling).  Pure VPU work -> hidden under the MXU.
    if keep_prob < 1.0:
        rows = (jax.lax.broadcasted_iota(jnp.int32, y.shape, 0) + i * tm).astype(jnp.uint32)
        cols = (jax.lax.broadcasted_iota(jnp.int32, y.shape, 1) + j * tn).astype(jnp.uint32)
        z = rows * jnp.uint32(d_model) + cols
        z = z ^ (seed_ref[0].astype(jnp.uint32) * jnp.uint32(0x9E3779B9))
        z = z ^ (z >> 16)
        z = z * jnp.uint32(0x7FEB352D)
        z = z ^ (z >> 15)
        z = z * jnp.uint32(0x846CA68B)
        z = z ^ (z >> 16)
        y = jnp.where(z < jnp.uint32(keep_threshold), y * (1.0 / keep_prob), 0.0)

    # ---- residual add: matching column slice of the (untouched) input tile ----
    if num_j == 1:
        x_res = x_ref[...].astype(jnp.float32)
    else:
        col0 = pl.multiple_of(j * tn, tn)                         # tn is a 128-multiple here
        x_res = x_ref[:, pl.ds(col0, tn)].astype(jnp.float32)
    o_ref[...] = (x_res + y).astype(o_ref.dtype)


def _choose_tiles(R, D, x_itemsize, mm_itemsize, out_itemsize, tm_req, tn_req):
    # Output-feature tile: use the whole d_model when the double-buffered weight slab
    # is cheap; otherwise the largest 128-multiple <= tn_req that divides D.
    if D % 128 != 0 or 2 * D * D * mm_itemsize <= _W_SLAB_BUDGET:
        tn = D
    else:
        tn = max(128, (min(tn_req, D) // 128) * 128)
        while tn > 128 and D % tn != 0:
            tn -= 128
        if D % tn != 0:
            tn = D
    nj = D // tn

    # Row tile: as large as possible (MXU M-fill, fewer pipeline steps), shrunk to fit
    # the VMEM budget; 8-aligned.
    tm = max(8, min(int(tm_req), R))
    tm = max(8, (tm // 8) * 8)

    def vmem_need(tm_):
        return (2 * tm_ * D * x_itemsize          # x row tile (double-buffered)
                + tm_ * D * mm_itemsize           # cached LayerNorm(x) scratch
                + 2 * D * tn * mm_itemsize        # weight column tile (double-buffered)
                + 2 * tm_ * tn * out_itemsize     # output tile (double-buffered)
                + 8 * D * 4)                      # gamma / beta / bias (+ headroom)

    while tm > 8 and vmem_need(tm) > _VMEM_BUDGET:
        tm = max(8, (tm // 2 // 8) * 8)

    return tm, tn, nj, vmem_need(tm)


def residual_connection(x, gamma, beta, w, b, *, drop_prob: float, seed: int,
                        eps: float = 1e-5, tm: int = 512, tn: int = 512,
                        matmul_dtype=jnp.bfloat16):
    """x: (B, S, D). gamma/beta/b: (1, D). w: (D, D)."""
    B, S, D = x.shape
    R = B * S
    x2 = x.reshape(R, D)

    # bf16 matmul operands (LN statistics stay in f32 inside the kernel).
    if matmul_dtype is not None:
        w = w.astype(matmul_dtype)
    mm_dtype = w.dtype

    tm, tn, nj, vmem_need = _choose_tiles(
        R, D, x.dtype.itemsize, jnp.dtype(mm_dtype).itemsize, x.dtype.itemsize, tm, tn)

    # Pad the row count so the grid divides evenly (padded rows are sliced off).
    R_pad = pl.cdiv(R, tm) * tm
    if R_pad != R:
        x2 = jnp.pad(x2, ((0, R_pad - R), (0, 0)))

    keep_prob = 1.0 - float(drop_prob)
    keep_threshold = min(int(keep_prob * (1 << 32)), (1 << 32) - 1)

    kern = functools.partial(_residual_kernel, eps=eps, keep_prob=keep_prob,
                             keep_threshold=keep_threshold, tn=tn, d_model=D, num_j=nj)

    seed_arr = jnp.array([seed], dtype=jnp.int32)

    cost = pl.CostEstimate(
        flops=2 * R_pad * D * D,
        transcendentals=R_pad,
        bytes_accessed=(2 * R_pad * D) * x.dtype.itemsize
        + (R_pad // tm) * D * D * jnp.dtype(mm_dtype).itemsize + 3 * D * 4,
    )

    vmem_limit = min(100 * 1024 * 1024, max(32 * 1024 * 1024, int(2 * vmem_need)))

    out = pl.pallas_call(
        kern,
        out_shape=jax.ShapeDtypeStruct((R_pad, D), x.dtype),
        grid_spec=pltpu.PrefetchScalarGridSpec(
            num_scalar_prefetch=1,                       # dropout seed lives in SMEM
            grid=(R_pad // tm, nj),                      # (row tiles, output-feature tiles)
            in_specs=[
                pl.BlockSpec((tm, D), lambda i, j, seed: (i, 0)),   # x row tile
                pl.BlockSpec((1, D), lambda i, j, seed: (0, 0)),    # gamma
                pl.BlockSpec((1, D), lambda i, j, seed: (0, 0)),    # beta
                pl.BlockSpec((D, tn), lambda i, j, seed: (0, j)),   # weight column tile
                pl.BlockSpec((1, tn), lambda i, j, seed: (0, j)),   # bias column tile
            ],
            out_specs=pl.BlockSpec((tm, tn), lambda i, j, seed: (i, j)),
            scratch_shapes=[pltpu.VMEM((tm, D), mm_dtype)],         # cached LayerNorm(x)
        ),
        compiler_params=pltpu.CompilerParams(
            dimension_semantics=("parallel", "arbitrary"),  # rows shard across v7x cores
            vmem_limit_bytes=vmem_limit),
        cost_estimate=cost,
    )(seed_arr, x2, gamma, beta, w, b)

    return out[:R].reshape(B, S, D)


def _reference_no_dropout(x, gamma, beta, w, b, eps=1e-5):
    mean = x.mean(-1, keepdims=True)
    var = ((x - mean) ** 2).mean(-1, keepdims=True)
    h = (x - mean) / jnp.sqrt(var + eps) * gamma + beta
    return x + (h @ w + b)


if __name__ == "__main__":
    B, S, D = 2, 8, 32          # batch=2, seq=8, d_model=32
    key = jax.random.PRNGKey(0)
    kx, kg, kb, kw, kbb = jax.random.split(key, 5)

    x = jax.random.normal(kx, (B, S, D), dtype=jnp.float32)
    # LayerNormalization params (alpha init 1, beta init 0 in the PyTorch block);
    # perturbed slightly so the test is non-trivial but deterministic.
    gamma = (1.0 + 0.05 * jax.random.normal(kg, (1, D))).astype(jnp.float32)
    beta = (0.05 * jax.random.normal(kb, (1, D))).astype(jnp.float32)
    # Deterministic sublayer = Linear(d_model, d_model).
    w = (jax.random.normal(kw, (D, D)) / jnp.sqrt(D)).astype(jnp.float32)
    b = (0.05 * jax.random.normal(kbb, (1, D))).astype(jnp.float32)

    # 1) drop_prob = 0.0: must match the pure-JAX f32 reference (kernel matmul is bf16,
    #    so allow a small tolerance).
    out0 = residual_connection(x, gamma, beta, w, b, drop_prob=0.0, seed=0)
    jax.block_until_ready(out0)
    ref0 = _reference_no_dropout(x, gamma, beta, w, b)
    assert out0.shape == x.shape
    assert jnp.allclose(out0, ref0, atol=2e-2, rtol=2e-2), "mismatch vs reference"

    # 2) drop_prob = 0.1: exercises the in-kernel dropout path (deterministic per seed).
    out1 = residual_connection(x, gamma, beta, w, b, drop_prob=0.1, seed=1234)
    out1_again = residual_connection(x, gamma, beta, w, b, drop_prob=0.1, seed=1234)
    jax.block_until_ready(out1)
    jax.block_until_ready(out1_again)
    assert out1.shape == x.shape and bool(jnp.all(jnp.isfinite(out1)))
    assert bool(jnp.array_equal(out1, out1_again)), "dropout must be deterministic per seed"
    assert not bool(jnp.allclose(out1, out0)), "dropout path had no effect"

    print("KERNEL_OK")
</pallas_src>

<mosaic_0001>
module attributes {stable_mosaic.version = 11 : i64} {
  func.func @_residual_kernel(%arg0: i32, %arg1: i32, %arg2: memref<1xi32, #tpu.memory_space<smem>>, %arg3: memref<16x32xf32, #tpu.memory_space<vmem>>, %arg4: memref<1x32xf32, #tpu.memory_space<vmem>>, %arg5: memref<1x32xf32, #tpu.memory_space<vmem>>, %arg6: memref<32x32xbf16, #tpu.memory_space<vmem>>, %arg7: memref<1x32xf32, #tpu.memory_space<vmem>>, %arg8: memref<16x32xf32, #tpu.memory_space<vmem>>, %arg9: memref<16x32xbf16, #tpu.memory_space<vmem>>) attributes {dimension_semantics = [#tpu.dimension_semantics<parallel>, #tpu.dimension_semantics<arbitrary>], iteration_bounds = array<i64: 1, 1>, scalar_prefetch = 1 : i64, scratch_operands = 1 : i64, tpu.core_type = #tpu.core_type<tc>, window_params = [{transform_indices = @transform_0, window_bounds = array<i64: 16, 32>}, {pipeline_mode = #tpu.pipeline_mode<synchronous>, transform_indices = @transform_1, window_bounds = array<i64: 1, 32>}, {pipeline_mode = #tpu.pipeline_mode<synchronous>, transform_indices = @transform_2, window_bounds = array<i64: 1, 32>}, {transform_indices = @transform_3, window_bounds = array<i64: 32, 32>}, {transform_indices = @transform_4, window_bounds = array<i64: 1, 32>}, {transform_indices = @transform_5, window_bounds = array<i64: 16, 32>}]} {
    %c0 = arith.constant 0 : index
    %c0_0 = arith.constant 0 : index
    %0 = vector.load %arg3[%c0, %c0_0] : memref<16x32xf32, #tpu.memory_space<vmem>>, vector<16x32xf32>
    %cst = arith.constant dense<0.000000e+00> : vector<16xf32>
    %1 = vector.multi_reduction <add>, %0, %cst [1] : vector<16x32xf32> to vector<16xf32>
    %2 = vector.shape_cast %1 : vector<16xf32> to vector<16x1xf32>
    %cst_1 = arith.constant 3.200000e+01 : f32
    %3 = vector.broadcast %cst_1 : f32 to vector<16x1xf32>
    %4 = arith.divf %2, %3 : vector<16x1xf32>
    %5 = vector.broadcast %4 : vector<16x1xf32> to vector<16x32xf32>
    %6 = arith.subf %0, %5 : vector<16x32xf32>
    %7 = arith.mulf %6, %6 : vector<16x32xf32>
    %cst_2 = arith.constant dense<0.000000e+00> : vector<16xf32>
    %8 = vector.multi_reduction <add>, %7, %cst_2 [1] : vector<16x32xf32> to vector<16xf32>
    %9 = vector.shape_cast %8 : vector<16xf32> to vector<16x1xf32>
    %cst_3 = arith.constant 3.200000e+01 : f32
    %10 = vector.broadcast %cst_3 : f32 to vector<16x1xf32>
    %11 = arith.divf %9, %10 : vector<16x1xf32>
    %12 = vector.broadcast %4 : vector<16x1xf32> to vector<16x32xf32>
    %13 = arith.subf %0, %12 : vector<16x32xf32>
    %cst_4 = arith.constant 9.99999974E-6 : f32
    %14 = vector.broadcast %cst_4 : f32 to vector<16x1xf32>
    %15 = arith.addf %11, %14 : vector<16x1xf32>
    %16 = math.rsqrt %15 : vector<16x1xf32>
    %17 = vector.broadcast %16 : vector<16x1xf32> to vector<16x32xf32>
    %18 = arith.mulf %13, %17 : vector<16x32xf32>
    %c0_5 = arith.constant 0 : index
    %c0_6 = arith.constant 0 : index
    %19 = vector.load %arg4[%c0_5, %c0_6] : memref<1x32xf32, #tpu.memory_space<vmem>>, vector<1x32xf32>
    %20 = vector.broadcast %19 : vector<1x32xf32> to vector<16x32xf32>
    %21 = arith.mulf %18, %20 : vector<16x32xf32>
    %c0_7 = arith.constant 0 : index
    %c0_8 = arith.constant 0 : index
    %22 = vector.load %arg5[%c0_7, %c0_8] : memref<1x32xf32, #tpu.memory_space<vmem>>, vector<1x32xf32>
    %23 = vector.broadcast %22 : vector<1x32xf32> to vector<16x32xf32>
    %24 = arith.addf %21, %23 : vector<16x32xf32>
    %25 = arith.truncf %24 : vector<16x32xf32> to vector<16x32xbf16>
    %c0_9 = arith.constant 0 : index
    %c0_10 = arith.constant 0 : index
    %26 = vector.load %arg9[%c0_9, %c0_10] : memref<16x32xbf16, #tpu.memory_space<vmem>>, vector<16x32xbf16>
    tpu.vector_store %arg9[%c0_9, %c0_10], %25 {strides = array<i32>} : memref<16x32xbf16, #tpu.memory_space<vmem>>, vector<16x32xbf16>,
    %c0_11 = arith.constant 0 : index
    %c0_12 = arith.constant 0 : index
    %27 = vector.load %arg9[%c0_11, %c0_12] : memref<16x32xbf16, #tpu.memory_space<vmem>>, vector<16x32xbf16>
    %c0_13 = arith.constant 0 : index
    %c0_14 = arith.constant 0 : index
    %28 = vector.load %arg6[%c0_13, %c0_14] : memref<32x32xbf16, #tpu.memory_space<vmem>>, vector<32x32xbf16>
    %cst_15 = arith.constant dense<0.000000e+00> : vector<16x32xf32>
    %29 = tpu.matmul %27, %28, %cst_15 {dimension_numbers = #tpu.dot_dimension_numbers<[1], [0], [0], [1], [0, 0, 1, 1], [], []>} : vector<16x32xbf16>, vector<32x32xbf16>, vector<16x32xf32> -> vector<16x32xf32>
    %c0_16 = arith.constant 0 : index
    %c0_17 = arith.constant 0 : index
    %30 = vector.load %arg7[%c0_16, %c0_17] : memref<1x32xf32, #tpu.memory_space<vmem>>, vector<1x32xf32>
    %31 = vector.broadcast %30 : vector<1x32xf32> to vector<16x32xf32>
    %32 = arith.addf %29, %31 : vector<16x32xf32>
    %c0_18 = arith.constant 0 : index
    %c0_19 = arith.constant 0 : index
    %33 = vector.load %arg3[%c0_18, %c0_19] : memref<16x32xf32, #tpu.memory_space<vmem>>, vector<16x32xf32>
    %34 = arith.addf %33, %32 : vector<16x32xf32>
    %c0_20 = arith.constant 0 : index
    %c0_21 = arith.constant 0 : index
    %35 = vector.load %arg8[%c0_20, %c0_21] : memref<16x32xf32, #tpu.memory_space<vmem>>, vector<16x32xf32>
    tpu.vector_store %arg8[%c0_20, %c0_21], %34 {strides = array<i32>} : memref<16x32xf32, #tpu.memory_space<vmem>>, vector<16x32xf32>,
    return
  }
  func.func @transform_0(%arg0: i32, %arg1: i32, %arg2: memref<1xi32, #tpu.memory_space<smem>>) -> (i32, i32) {
    %c0_i32 = arith.constant 0 : i32
    %c0_i32_0 = arith.constant 0 : i32
    return %arg0, %c0_i32 : i32, i32
  }
  func.func @transform_1(%arg0: i32, %arg1: i32, %arg2: memref<1xi32, #tpu.memory_space<smem>>) -> (i32, i32) {
    %c0_i32 = arith.constant 0 : i32
    %c0_i32_0 = arith.constant 0 : i32
    %c0_i32_1 = arith.constant 0 : i32
    return %c0_i32, %c0_i32_0 : i32, i32
  }
  func.func @transform_2(%arg0: i32, %arg1: i32, %arg2: memref<1xi32, #tpu.memory_space<smem>>) -> (i32, i32) {
    %c0_i32 = arith.constant 0 : i32
    %c0_i32_0 = arith.constant 0 : i32
    %c0_i32_1 = arith.constant 0 : i32
    return %c0_i32, %c0_i32_0 : i32, i32
  }
  func.func @transform_3(%arg0: i32, %arg1: i32, %arg2: memref<1xi32, #tpu.memory_space<smem>>) -> (i32, i32) {
    %c0_i32 = arith.constant 0 : i32
    %c0_i32_0 = arith.constant 0 : i32
    return %c0_i32, %arg1 : i32, i32
  }
  func.func @transform_4(%arg0: i32, %arg1: i32, %arg2: memref<1xi32, #tpu.memory_space<smem>>) -> (i32, i32) {
    %c0_i32 = arith.constant 0 : i32
    %c0_i32_0 = arith.constant 0 : i32
    return %c0_i32, %arg1 : i32, i32
  }
  func.func @transform_5(%arg0: i32, %arg1: i32, %arg2: memref<1xi32, #tpu.memory_space<smem>>) -> (i32, i32) {
    %c0_i32 = arith.constant 0 : i32
    return %arg0, %arg1 : i32, i32
  }
}

</mosaic_0001>

<bundles_post_ra>
// kernel: tpu_custom_call.1
= control target key start
LH: loop header
LB: loop body
LE: loop exit
PB: predicated region body
PF: predicated region fallthrough
CT: control target
= control target key end

     0   :  { %12 = vsyncpa [#allocation6], 0  ;;  %s401_s0 = inlined_call_operand.<no memory space> [shape: s32[1], index: 0, kind: input, shape index: {}]   ;;  %s402_s1 = inlined_call_operand.hbm [shape: f32[16,32], index: 1, kind: input, shape index: {}]   ;;  %s403_s2 = inlined_call_operand.vmem [shape: f32[1,32], index: 2, kind: input, shape index: {}]   ;;  %s404_s3 = inlined_call_operand.vmem [shape: f32[1,32], index: 3, kind: input, shape index: {}]   ;;  %s405_s4 = inlined_call_operand.hbm [shape: bf16[32,32], index: 4, kind: input, shape index: {}]   ;;  %s406_s5 = inlined_call_operand.vmem [shape: f32[1,32], index: 5, kind: input, shape index: {}]   ;;  %s407_s6 = inlined_call_operand.hbm [shape: f32[16,32], index: 6, kind: output, shape index: {}]  }
   0x1   :  { %13 = vsyncpa [#allocation9], 0 }
   0x2   :  { %14 = vsyncpa [#allocation7], 0  ;;  %s298_s0 = smov [#allocation5]   ;;  %s226_s24 = scalar_lea.hbm %s402_s1, 256 }
   0x3   :  { %s20_s21 = sshll.u32 %s298_s0, 4  ;;  %p227_p0 = scmp.ne.s32.totalorder %s402_s1, %s226_s24  ;;  %s21_s21 = int_to_ptr.vmem [resolvable:$true] %s20_s21 }
   0x4   :  { %p230_p1 = scmp.lt.u32.totalorder %s226_s24, %s402_s1 }
   0x6   :  { %p232_p2 = pnand %p230_p1, %p227_p0 }
   0x8   :  { %235 = shalt.err (!%p232_p2)
}
   0x9   :  { %s236_s29 = scalar_lea.vmem %s21_s21, 256  ;;  %p241_p4 = scmp.lt.s32.totalorder %s21_s21, %s21_s21 }
   0xa   :  { %p237_p3 = scmp.ne.s32.totalorder %s21_s21, %s236_s29  ;;  %p242_p5 = scmp.lt.s32.totalorder %s236_s29, %s236_s29 }
   0xc   :  { %p243_p6 = por %p242_p5, %p241_p4 }
   0xe   :  { %p244_p7 = pnand %p243_p6, %p237_p3 }
  0x10   :  { %247 = shalt.err (!%p244_p7)
}
  0x11   :  { %s299_s30 = smov 128   ;;  %s300_s7 = smov 8  }
  0x12   :  { %26 = dma.hbm_to_vmem [thread:$0]  %s402_s1, 256, %s21_s21, [#allocation6], %s299_s30, %s299_s30, %s300_s7  }
  0x13   :  { %s301_s10 = smov [#allocation8]   ;;  %s248_s14 = scalar_lea.hbm %s405_s4, 256 }
  0x14   :  { %s36_s11 = sshll.u32 %s301_s10, 4  ;;  %p249_p8 = scmp.ne.s32.totalorder %s405_s4, %s248_s14  ;;  %s37_s11 = int_to_ptr.vmem [resolvable:$true] %s36_s11 }
  0x15   :  { %p252_p9 = scmp.lt.u32.totalorder %s248_s14, %s405_s4 }
  0x17   :  { %p254_p10 = pnand %p252_p9, %p249_p8 }
  0x19   :  { %257 = shalt.err (!%p254_p10)
}
  0x1a   :  { %s258_s19 = scalar_lea.vmem %s37_s11, 256  ;;  %p263_p12 = scmp.lt.s32.totalorder %s37_s11, %s37_s11 }
  0x1b   :  { %p259_p11 = scmp.ne.s32.totalorder %s37_s11, %s258_s19  ;;  %p264_p13 = scmp.lt.s32.totalorder %s258_s19, %s258_s19 }
  0x1d   :  { %p265_p0 = por %p264_p13, %p263_p12 }
  0x1f   :  { %p266_p1 = pnand %p265_p0, %p259_p11 }
  0x21   :  { %269 = shalt.err (!%p266_p1)
}
  0x22   :  { %s302_s1 = smov 64   ;;  %s303_s20 = smov 4  }
  0x23   :  { %42 = dma.hbm_to_vmem [thread:$0]  %s405_s4, 256, %s37_s11, [#allocation9], %s302_s1, %s302_s1, %s303_s20  }
  0x24   :  { %292 = dma.done.wait [#allocation6], 256  }
  0x25   :  { %293 = vsyncadd [#allocation6], 4294967040 }
  0x26   :  { %294 = dma.done.wait [#allocation9], 256  }
  0x27   :  { %295 = vsyncadd [#allocation9], 4294967040  ;;  %vm54_vm0 = vcmask 261120   ;;  %v52_v0 = vld [vmem:[#allocation5] sm:$0xff]  ;;  %v53_v1 = vld [vmem:[#allocation5 + $0x8] sm:$0xff]  ;;  %v304_v15 = vmov 0.0  }
  0x28   :  { %v55_v2 = vsel %vm54_vm0, %v52_v0, 0.0  ;;  %v58_v3 = vsel %vm54_vm0, %v53_v1, 0.0  ;;  %v220_v14 = vld [vmem:[#allocation8] sm:$0xff]   ;;  %203 = vmatprep.subr.bf16.mxu0 %v304_v15  ;;  %v221_v16 = vld [vmem:[#allocation8 + $0x8] sm:$0xff]   ;;  %vm305_vm1 = vmmov 0  }
  0x29   :  { %56 = vadd.xlane.f32.xlu0 %v55_v2  ;;  %204 = vmatpush3.bf16.msra.mxu0 %v220_v14  ;;  %v194_v25 = vld [vmem:[%s403_s2] ss:$0 sm:$0xff]  ;;  %s306_s2 = smov [#allocation10]  }
  0x2a   :  { %207 = vmatprep.mubr.msk.bf16.mxu0 %vm305_vm1, %v304_v15  ;;  %205 = vmatprep.subr.bf16.mxu0 %v304_v15  ;;  %v195_v29 = vld [vmem:[%s404_s3] ss:$0 sm:$0xff]  ;;  %s181_s27 = sshll.u32 %s306_s2, 4  ;;  %s182_s27 = int_to_ptr.vmem [resolvable:$true] %s181_s27 }
  0x2b   :  { %v196_v35 = vld [vmem:[%s406_s5] ss:$0 sm:$0xff]  ;;  %s270_s3 = scalar_lea.vmem %s182_s27, 256  ;;  %p275_p3 = scmp.lt.s32.totalorder %s182_s27, %s182_s27 }
  0x2c   :  { %p271_p2 = scmp.ne.s32.totalorder %s182_s27, %s270_s3  ;;  %p276_p4 = scmp.lt.s32.totalorder %s270_s3, %s270_s3 }
  0x2d   :  { %59 = vadd.xlane.f32.xlu0 %v58_v3  ;;  %206 = vmatpush3.bf16.msra.mxu0 %v221_v16 }
  0x2e   :  { %p277_p5 = por %p276_p4, %p275_p3 }
  0x30   :  { %p278_p6 = pnand %p277_p5, %p271_p2 }
  0xb6   :  { %v57_v4 = vpop.xlane.xlu0 %56 }
  0xb7   :  { %v62_v5 = vmul.f32 0.03125, %v57_v4 }
  0xb9   :  { %v64_v6 = vsub.f32 %v52_v0, %v62_v5 }
  0xba   :  { %v60_v7 = vpop.xlane.xlu0 %59 }
  0xbb   :  { %v63_v8 = vmul.f32 0.03125, %v60_v7  ;;  %v66_v9 = vmul.f32 %v64_v6, %v64_v6 }
  0xbd   :  { %v65_v10 = vsub.f32 %v53_v1, %v63_v8  ;;  %v68_v11 = vsel %vm54_vm0, %v66_v9, 0.0 }
  0xbe   :  { %69 = vadd.xlane.f32.xlu1 %v68_v11 }
  0xbf   :  { %v67_v12 = vmul.f32 %v65_v10, %v65_v10 }
  0xc1   :  { %v71_v13 = vsel %vm54_vm0, %v67_v12, 0.0 }
  0xc2   :  { %72 = vadd.xlane.f32.xlu1 %v71_v13 }
 0x14b   :  { %v70_v17 = vpop.xlane.xlu1 %69 }
 0x14c   :  { %v74_v18 = vmul.f32 0.03125, %v70_v17 }
 0x14e   :  { %v76_v19 = vadd.f32 1e-05, %v74_v18 }
 0x14f   :  { %v73_v20 = vpop.xlane.xlu1 %72 }
 0x150   :  { %222 = vrsqrt.f32 %v76_v19  ;;  %v75_v21 = vmul.f32 0.03125, %v73_v20 }
 0x152   :  { %v77_v22 = vadd.f32 1e-05, %v75_v21 }
 0x154   :  { %224 = vrsqrt.f32 %v77_v22 }
 0x15a   :  { %v223_v23 = vpop.eup %222 }
 0x15b   :  { %v80_v24 = vmul.f32 %v223_v23, %v64_v6 }
 0x15d   :  { %v89_v27 = vmul.f32 %v194_v25, %v80_v24 }
 0x15e   :  { %v225_v26 = vpop.eup %224 }
 0x15f   :  { %v81_v28 = vmul.f32 %v225_v26, %v65_v10  ;;  %v98_v31 = vadd.f32 %v195_v29, %v89_v27 }
 0x161   :  { %v90_v30 = vmul.f32 %v194_v25, %v81_v28 }
 0x163   :  { %v99_v32 = vadd.f32 %v195_v29, %v90_v30 }
 0x165   :  { %v100_v33 = vpack.c.bf16 %v99_v32, %v98_v31 }
 0x167   :  { %101 = vst.msk [vmem:[#allocation2] sm:$0xff] %vm54_vm0, %v100_v33 }
 0x16e   :  { %v102_v34 = vld [vmem:[#allocation2] sm:$0xff] }
 0x16f   :  { %208 = vmatmul.mubr.msk.bf16.vlgmr.msra.gmra.mrb[0].mxu0 %vm54_vm0, %v102_v34 }
 0x242   :  { %v163_v36 = vpop.f32.mrb[0].mxu0 }
 0x243   :  { %v164_v37 = vadd.f32 %v196_v35, %v163_v36  ;;  %v209_v38 = vpop.f32.mrb[1].mxu0 }
 0x244   :  { %v166_v39 = vpop.f32.mrb[2].mxu0 }
 0x245   :  { %v172_v40 = vadd.f32 %v164_v37, %v52_v0  ;;  %v167_v41 = vadd.f32 %v196_v35, %v166_v39  ;;  %v210_v42 = vpop.f32.mrb[3].mxu0 }
 0x247   :  { %174 = vst.msk [vmem:[#allocation10] sm:$0xff] %vm54_vm0, %v172_v40  ;;  %v173_v43 = vadd.f32 %v167_v41, %v53_v1 }
 0x249   :  { %175 = vst.msk [vmem:[#allocation10 + $0x8] sm:$0xff] %vm54_vm0, %v173_v43 }
 0x24a   :  { %281 = shalt.err (!%p278_p6)
}
 0x24b   :  { %s282_s29 = scalar_lea.hbm %s407_s6, 256 }
 0x24c   :  { %p283_p7 = scmp.ne.s32.totalorder %s407_s6, %s282_s29  ;;  %p286_p8 = scmp.lt.u32.totalorder %s282_s29, %s407_s6 }
 0x24e   :  { %p288_p9 = pnand %p286_p8, %p283_p7 }
 0x250   :  { %291 = shalt.err (!%p288_p9)
}
 0x251   :  { %187 = dma.vmem_to_hbm [thread:$0]  %s182_s27, 256, %s407_s6, [#allocation7], %s299_s30, %s299_s30, %s300_s7  }
 0x252   :  { %296 = dma.done.wait [#allocation7], 256  }
 0x253   :  { %297 = vsyncadd [#allocation7], 4294967040 }
 0x254   :  { %191 = vsyncpa [#allocation6], 1 }
 0x255   :  { %192 = vsyncpa [#allocation9], 1 }
 0x256   :  { %193 = vsyncpa [#allocation7], 1 }

</bundles_post_ra>
